<compile_context>
chip_gen: v6e
topology: v6e:2x2x1
jax: 0.10.0
libtpu: 0.0.40
codegen_flags: <defaults>
</compile_context>

<pallas_src>
import functools

import jax
import jax.numpy as jnp
from jax.experimental import pallas as pl
from jax.experimental.pallas import tpu as pltpu


def _round_up(x: int, m: int) -> int:
    return ((x + m - 1) // m) * m


def _sublane(dtype) -> int:
    """Sublane packing granule for the second-to-last dim."""
    return {4: 8, 2: 16, 1: 32}.get(jnp.dtype(dtype).itemsize, 8)


def _pick_tile(dim_p: int, target: int, granule: int) -> int:
    """Largest multiple of `granule` that divides `dim_p` and is <= target.

    `dim_p` is already a multiple of `granule`, so this always succeeds and
    the grid covers the padded dim exactly (no extra padding to tile size).
    """
    if dim_p <= target:
        return dim_p
    best = granule
    t = granule
    while t <= target:
        if dim_p % t == 0:
            best = t
        t += granule
    return best


# ---------------------------------------------------------------------------
# Kernels
# ---------------------------------------------------------------------------
def _fc_kernel_single_k(x_ref, w_ref, o_ref, *, apply_relu: bool):
    """Whole contraction in one tile: x (tm, K), w (K, tn) -> o (tm, tn)."""
    acc = jnp.dot(x_ref[...], w_ref[...], preferred_element_type=jnp.float32)
    if apply_relu:
        acc = jnp.maximum(acc, 0.0)
    o_ref[...] = acc.astype(o_ref.dtype)


def _fc_kernel_multi_k_f32(x_ref, w_ref, o_ref, *, apply_relu: bool):
    """K-tiled path, f32 output: accumulate directly into o_ref (no scratch)."""
    k = pl.program_id(2)

    @pl.when(k == 0)
    def _():
        o_ref[...] = jnp.zeros_like(o_ref)

    o_ref[...] += jnp.dot(x_ref[...], w_ref[...],
                          preferred_element_type=jnp.float32)

    if apply_relu:
        @pl.when(k == pl.num_programs(2) - 1)
        def _():
            o_ref[...] = jnp.maximum(o_ref[...], 0.0)


def _fc_kernel_multi_k_acc(x_ref, w_ref, o_ref, acc_ref, *, apply_relu: bool):
    """K-tiled path, narrow output dtype: f32 VMEM accumulator scratch."""
    k = pl.program_id(2)

    @pl.when(k == 0)
    def _():
        acc_ref[...] = jnp.zeros_like(acc_ref)

    acc_ref[...] += jnp.dot(x_ref[...], w_ref[...],
                            preferred_element_type=jnp.float32)

    @pl.when(k == pl.num_programs(2) - 1)
    def _():
        acc = acc_ref[...]
        if apply_relu:
            acc = jnp.maximum(acc, 0.0)
        o_ref[...] = acc.astype(o_ref.dtype)


# ---------------------------------------------------------------------------
# Wrapper
# ---------------------------------------------------------------------------
_FAST_PATH_FLOPS = 1 << 21  # below ~2 MFLOP, launch + pad/slice overhead dominates


def fully_connected(
    x: jax.Array,
    weight: jax.Array,
    activation=None,
    *,
    tm: int = 256,
    tn: int = 512,
    tk: int = 512,
    max_single_k: int = 2048,
    allow_fast_path: bool = True,
) -> jax.Array:
    """x: [..., in_features]; weight: [out_features, in_features] (nn.Linear layout).

    `activation` may be None, the string "relu" (fused in-kernel), or any
    callable (applied after the matmul, matching the PyTorch module).
    """
    orig_shape = x.shape
    in_f = orig_shape[-1]
    out_f, in_f_w = weight.shape
    assert in_f == in_f_w, "feature dims must match"

    x2d = x.reshape(-1, in_f)
    n = x2d.shape[0]

    apply_relu = (activation == "relu")
    post_fn = activation if callable(activation) else None

    def _finish(out2d):
        if post_fn is not None:
            out2d = post_fn(out2d)
        return out2d.reshape(*orig_shape[:-1], out_f)

    # Tiny-shape fast path: for real GCN shapes (N~8, feat~32) the pallas call
    # is pure launch overhead -- let XLA's fused matmul handle it.
    if allow_fast_path and 2 * n * in_f * out_f < _FAST_PATH_FLOPS:
        out = jnp.dot(x2d, weight.T, preferred_element_type=jnp.float32)
        if apply_relu:
            out = jnp.maximum(out, 0.0)
        return _finish(out.astype(x.dtype))

    # One-time transpose to [in, out] so the kernel is a plain (tm,tk)x(tk,tn)
    # matmul (no in-kernel transposes stealing MXU issue slots).  In a real
    # model, do this once at parameter-load time.
    w_t = weight.T

    # Pad only to hardware alignment (sublane x 128 lanes), NOT to tile size.
    sub = _sublane(x.dtype)
    n_p = _round_up(n, sub)
    in_p = _round_up(in_f, 128)
    out_p = _round_up(out_f, 128)

    x_p = x2d if (n_p == n and in_p == in_f) else jnp.pad(
        x2d, ((0, n_p - n), (0, in_p - in_f)))
    w_p = w_t if (in_p == in_f and out_p == out_f) else jnp.pad(
        w_t, ((0, in_p - in_f), (0, out_p - out_f)))

    # Tiles are divisors of the padded dims (exact grid coverage, no waste).
    tm = _pick_tile(n_p, tm, sub)
    tn = _pick_tile(out_p, tn, 128)
    single_k = in_p <= max_single_k
    tk = in_p if single_k else _pick_tile(in_p, tk, 128)

    out_dtype = x.dtype
    itemsize = jnp.dtype(x.dtype).itemsize
    gi, gj = n_p // tm, out_p // tn

    if single_k:
        grid = (gi, gj)
        in_specs = [
            pl.BlockSpec((tm, tk), lambda i, j: (i, 0)),   # x tile
            pl.BlockSpec((tk, tn), lambda i, j: (0, j)),   # w^T tile
        ]
        out_specs = pl.BlockSpec((tm, tn), lambda i, j: (i, j))
        scratch = []
        kernel = functools.partial(_fc_kernel_single_k, apply_relu=apply_relu)
        dims = ("parallel", "parallel")
    else:
        gk = in_p // tk
        grid = (gi, gj, gk)  # reduction axis last
        in_specs = [
            pl.BlockSpec((tm, tk), lambda i, j, k: (i, k)),
            pl.BlockSpec((tk, tn), lambda i, j, k: (k, j)),
        ]
        out_specs = pl.BlockSpec((tm, tn), lambda i, j, k: (i, j))
        if jnp.dtype(out_dtype) == jnp.float32:
            kernel = functools.partial(_fc_kernel_multi_k_f32,
                                       apply_relu=apply_relu)
            scratch = []
        else:
            kernel = functools.partial(_fc_kernel_multi_k_acc,
                                       apply_relu=apply_relu)
            scratch = [pltpu.VMEM((tm, tn), jnp.float32)]
        dims = ("parallel", "parallel", "arbitrary")

    # Grid-aware bytes: x re-read per N-block, w re-read per M-block.
    cost = pl.CostEstimate(
        flops=2 * n_p * in_p * out_p,
        transcendentals=0,
        bytes_accessed=(x_p.size * gj + w_p.size * gi + n_p * out_p) * itemsize,
    )

    out_padded = pl.pallas_call(
        kernel,
        out_shape=jax.ShapeDtypeStruct((n_p, out_p), out_dtype),
        grid_spec=pltpu.PrefetchScalarGridSpec(
            num_scalar_prefetch=0,
            grid=grid,
            in_specs=in_specs,
            out_specs=out_specs,
            scratch_shapes=scratch,
        ),
        compiler_params=pltpu.CompilerParams(
            dimension_semantics=dims,
            # Budget fits v7x's 64 MiB/TC; plenty of headroom on v5e/v6e.
            vmem_limit_bytes=48 * 1024 * 1024,
        ),
        cost_estimate=cost,
    )(x_p, w_p)

    if n_p != n or out_p != out_f:
        out_padded = out_padded[:n, :out_f]
    return _finish(out_padded)


# ---------------------------------------------------------------------------
# Tests
# ---------------------------------------------------------------------------
if __name__ == "__main__":
    key = jax.random.PRNGKey(0)
    k_x, k_w = jax.random.split(key)

    # --- Small GCN shapes: N nodes, in->out features. ---
    N, IN_F, OUT_F = 8, 32, 32
    x = jax.random.normal(k_x, (N, IN_F), dtype=jnp.float32)
    bound = 1.0 / (IN_F ** 0.5)   # nn.Linear default init: U(-1/sqrt(in), 1/sqrt(in))
    weight = jax.random.uniform(k_w, (OUT_F, IN_F), dtype=jnp.float32,
                                minval=-bound, maxval=bound)

    # Force the Pallas kernel (single-K path, grid (1,1)).
    out = jax.block_until_ready(
        fully_connected(x, weight, activation="relu", allow_fast_path=False))
    ref = jnp.maximum(x @ weight.T, 0.0)
    assert out.shape == ref.shape, "shape mismatch vs reference"
    assert jnp.allclose(out, ref, atol=1e-5, rtol=1e-5), "small-shape mismatch"

    # No-activation path + tiny-shape fast path (plain XLA dot).
    out_lin = jax.block_until_ready(fully_connected(x, weight, activation=None))
    assert jnp.allclose(out_lin, x @ weight.T, atol=1e-5, rtol=1e-5), "linear mismatch"

    # --- Multi-block M/N, single-K tile (out_f not a multiple of the tile). ---
    N2, IN2, OUT2 = 384, 384, 640
    x2 = jax.random.normal(k_x, (N2, IN2), dtype=jnp.float32)
    w2 = jax.random.uniform(k_w, (OUT2, IN2), dtype=jnp.float32,
                            minval=-1.0 / (IN2 ** 0.5), maxval=1.0 / (IN2 ** 0.5))
    out2 = jax.block_until_ready(fully_connected(x2, w2, activation="relu"))
    ref2 = jnp.maximum(x2 @ w2.T, 0.0)
    assert jnp.allclose(out2, ref2, atol=1e-3, rtol=1e-3), "tiled M/N mismatch"

    # --- K-tiled path (in_features > max_single_k), f32 direct accumulation. ---
    N3, IN3, OUT3 = 128, 2304, 256
    x3 = jax.random.normal(k_x, (N3, IN3), dtype=jnp.float32)
    w3 = jax.random.uniform(k_w, (OUT3, IN3), dtype=jnp.float32,
                            minval=-1.0 / (IN3 ** 0.5), maxval=1.0 / (IN3 ** 0.5))
    out3 = jax.block_until_ready(fully_connected(x3, w3, activation="relu"))
    ref3 = jnp.maximum(x3 @ w3.T, 0.0)
    assert jnp.allclose(out3, ref3, atol=1e-3, rtol=1e-3), "K-tiled f32 mismatch"

    # --- bf16 inputs, forced K-tiled accumulator-scratch path. ---
    N4, IN4, OUT4 = 32, 384, 128
    x4 = jax.random.normal(k_x, (N4, IN4), dtype=jnp.float32).astype(jnp.bfloat16)
    w4 = jax.random.uniform(k_w, (OUT4, IN4), dtype=jnp.float32,
                            minval=-1.0 / (IN4 ** 0.5),
                            maxval=1.0 / (IN4 ** 0.5)).astype(jnp.bfloat16)
    out4 = jax.block_until_ready(
        fully_connected(x4, w4, activation="relu", tk=128, max_single_k=128,
                        allow_fast_path=False))
    ref4 = jnp.maximum(x4.astype(jnp.float32) @ w4.astype(jnp.float32).T, 0.0)
    assert jnp.allclose(out4.astype(jnp.float32), ref4, atol=2e-2, rtol=2e-2), \
        "bf16 K-tiled mismatch"

    print("KERNEL_OK")
</pallas_src>

<mosaic_0001>
module attributes {stable_mosaic.version = 11 : i64} {
  func.func @_fc_kernel_single_k(%arg0: i32, %arg1: i32, %arg2: memref<8x128xf32, #tpu.memory_space<vmem>>, %arg3: memref<128x128xf32, #tpu.memory_space<vmem>>, %arg4: memref<8x128xf32, #tpu.memory_space<vmem>>) attributes {dimension_semantics = [#tpu.dimension_semantics<parallel>, #tpu.dimension_semantics<parallel>], iteration_bounds = array<i64: 1, 1>, scalar_prefetch = 0 : i64, scratch_operands = 0 : i64, tpu.core_type = #tpu.core_type<tc>, window_params = [{transform_indices = @transform_0, window_bounds = array<i64: 8, 128>}, {transform_indices = @transform_1, window_bounds = array<i64: 128, 128>}, {transform_indices = @transform_2, window_bounds = array<i64: 8, 128>}]} {
    %c0 = arith.constant 0 : index
    %c0_0 = arith.constant 0 : index
    %0 = vector.load %arg2[%c0, %c0_0] : memref<8x128xf32, #tpu.memory_space<vmem>>, vector<8x128xf32>
    %c0_1 = arith.constant 0 : index
    %c0_2 = arith.constant 0 : index
    %1 = vector.load %arg3[%c0_1, %c0_2] : memref<128x128xf32, #tpu.memory_space<vmem>>, vector<128x128xf32>
    %cst = arith.constant dense<0.000000e+00> : vector<8x128xf32>
    %2 = tpu.matmul %0, %1, %cst {dimension_numbers = #tpu.dot_dimension_numbers<[1], [0], [0], [1], [0, 0, 1, 1], [], []>} : vector<8x128xf32>, vector<128x128xf32>, vector<8x128xf32> -> vector<8x128xf32>
    %cst_3 = arith.constant 0.000000e+00 : f32
    %3 = vector.broadcast %cst_3 : f32 to vector<8x128xf32>
    %4 = arith.maximumf %2, %3 : vector<8x128xf32>
    %c0_4 = arith.constant 0 : index
    %c0_5 = arith.constant 0 : index
    %5 = vector.load %arg4[%c0_4, %c0_5] : memref<8x128xf32, #tpu.memory_space<vmem>>, vector<8x128xf32>
    tpu.vector_store %arg4[%c0_4, %c0_5], %4 {strides = array<i32>} : memref<8x128xf32, #tpu.memory_space<vmem>>, vector<8x128xf32>,
    return
  }
  func.func @transform_0(%arg0: i32, %arg1: i32) -> (i32, i32) {
    %c0_i32 = arith.constant 0 : i32
    %c0_i32_0 = arith.constant 0 : i32
    return %arg0, %c0_i32 : i32, i32
  }
  func.func @transform_1(%arg0: i32, %arg1: i32) -> (i32, i32) {
    %c0_i32 = arith.constant 0 : i32
    %c0_i32_0 = arith.constant 0 : i32
    return %c0_i32, %arg1 : i32, i32
  }
  func.func @transform_2(%arg0: i32, %arg1: i32) -> (i32, i32) {
    %c0_i32 = arith.constant 0 : i32
    return %arg0, %arg1 : i32, i32
  }
}

</mosaic_0001>

<bundles_post_ra>
// kernel: tpu_custom_call.1
= control target key start
LH: loop header
LB: loop body
LE: loop exit
PB: predicated region body
PF: predicated region fallthrough
CT: control target
= control target key end

     0   :  { %7 = vsyncpa [#allocation3], 0  ;;  %s299_s0 = inlined_call_operand.hbm [shape: f32[8,128], index: 0, kind: input, shape index: {}]   ;;  %s300_s1 = inlined_call_operand.hbm [shape: f32[128,128], index: 1, kind: input, shape index: {}]   ;;  %s301_s2 = inlined_call_operand.hbm [shape: f32[8,128], index: 2, kind: output, shape index: {}]  }
   0x1   :  { %8 = vsyncpa [#allocation6], 0 }
   0x2   :  { %9 = vsyncpa [#allocation4], 0  ;;  %s268_s9 = smov [#allocation2]   ;;  %s269_s11 = smov [#allocation5]  }
   0x3   :  { %s16_s10 = sshll.u32 %s268_s9, 4  ;;  %s25_s12 = sshll.u32 %s269_s11, 4  ;;  %s17_s10 = int_to_ptr.vmem [resolvable:$true] %s16_s10  ;;  %s26_s12 = int_to_ptr.vmem [resolvable:$true] %s25_s12 }
   0x4   :  { %s210_s13 = scalar_lea.vmem %s17_s10, 128  ;;  %p215_p1 = scmp.lt.s32.totalorder %s17_s10, %s17_s10 }
   0x5   :  { %p211_p0 = scmp.ne.s32.totalorder %s17_s10, %s210_s13  ;;  %p216_p2 = scmp.lt.s32.totalorder %s210_s13, %s210_s13 }
   0x7   :  { %p217_p3 = por %p216_p2, %p215_p1 }
   0x9   :  { %p218_p4 = pnand %p217_p3, %p211_p0 }
   0xb   :  { %221 = shalt.err (!%p218_p4)
}
   0xc   :  { %19 = dma.hbm_to_vmem [thread:$0]  %s299_s0, 128, %s17_s10, [#allocation3]  }
   0xd   :  { %s230_s16 = scalar_lea.vmem %s26_s12, 2048  ;;  %p235_p6 = scmp.lt.s32.totalorder %s26_s12, %s26_s12 }
   0xe   :  { %p231_p5 = scmp.ne.s32.totalorder %s26_s12, %s230_s16  ;;  %p236_p7 = scmp.lt.s32.totalorder %s230_s16, %s230_s16 }
  0x10   :  { %p237_p8 = por %p236_p7, %p235_p6 }
  0x12   :  { %p238_p9 = pnand %p237_p8, %p231_p5 }
  0x14   :  { %241 = shalt.err (!%p238_p9)
}
  0x15   :  { %s270_s17 = smov 128   ;;  %s271_s18 = smov 8  }
  0x16   :  { %31 = dma.hbm_to_vmem [thread:$0]  %s300_s1, 2048, %s26_s12, [#allocation6], %s270_s17, %s270_s17, %s271_s18  }
  0x17   :  { %262 = dma.done.wait [#allocation3], 128  }
  0x18   :  { %263 = vsyncadd [#allocation3], 4294967168 }
  0x19   :  { %264 = dma.done.wait [#allocation6], 2048  }
  0x1a   :  { %265 = vsyncadd [#allocation6], 4294965248  ;;  %v272_v0 = vmov 0.0   ;;  %vm273_vm0 = vmmov 0   ;;  %v54_v1 = vld [vmem:[#allocation5 + $0x78] sm:$0xff]  ;;  %v53_v2 = vld [vmem:[#allocation5 + $0x70] sm:$0xff] }
  0x1b   :  { %160 = vmatprep.subr.mxu0 %v272_v0  ;;  %192 = vmatprep.mubr.msk.f32.mxu0 %vm273_vm0, %v272_v0  ;;  %v52_v3 = vld [vmem:[#allocation5 + $0x68] sm:$0xff]  ;;  %v51_v4 = vld [vmem:[#allocation5 + $0x60] sm:$0xff]  ;;  %v50_v5 = vld [vmem:[#allocation5 + $0x58] sm:$0xff]  ;;  %s274_s0 = smov [#allocation7]  }
  0x1c   :  { %161 = vmatpush3.msra.mxu0 %v54_v1  ;;  %v49_v6 = vld [vmem:[#allocation5 + $0x50] sm:$0xff]  ;;  %v48_v7 = vld [vmem:[#allocation5 + $0x48] sm:$0xff]  ;;  %v47_v8 = vld [vmem:[#allocation5 + $0x40] sm:$0xff]  ;;  %s133_s1 = sshll.u32 %s274_s0, 4  ;;  %s134_s1 = int_to_ptr.vmem [resolvable:$true] %s133_s1 }
  0x1d   :  { %162 = vmatprep.subr.mxu0 %v272_v0  ;;  %v46_v9 = vld [vmem:[#allocation5 + $0x38] sm:$0xff]  ;;  %v45_v10 = vld [vmem:[#allocation5 + $0x30] sm:$0xff]  ;;  %v44_v11 = vld [vmem:[#allocation5 + $0x28] sm:$0xff]  ;;  %s242_s21 = scalar_lea.vmem %s134_s1, 128  ;;  %p247_p11 = scmp.lt.s32.totalorder %s134_s1, %s134_s1 }
  0x1e   :  { %163 = vmatpush3.msra.mxu0 %v53_v2  ;;  %v43_v12 = vld [vmem:[#allocation5 + $0x20] sm:$0xff]  ;;  %v42_v13 = vld [vmem:[#allocation5 + $0x18] sm:$0xff]  ;;  %v41_v14 = vld [vmem:[#allocation5 + $0x10] sm:$0xff]  ;;  %p243_p10 = scmp.ne.s32.totalorder %s134_s1, %s242_s21  ;;  %p248_p12 = scmp.lt.s32.totalorder %s242_s21, %s242_s21 }
  0x1f   :  { %164 = vmatprep.subr.mxu0 %v272_v0  ;;  %v40_v15 = vld [vmem:[#allocation5 + $0x8] sm:$0xff]  ;;  %v39_v16 = vld [vmem:[#allocation5] sm:$0xff]  ;;  %v38_v17 = vld [vmem:[#allocation2] sm:$0xff] }
  0x20   :  { %165 = vmatpush3.msra.mxu0 %v52_v3  ;;  %p249_p13 = por %p248_p12, %p247_p11 }
  0x21   :  { %166 = vmatprep.subr.mxu0 %v272_v0 }
  0x22   :  { %167 = vmatpush3.msra.mxu0 %v51_v4  ;;  %p250_p0 = pnand %p249_p13, %p243_p10 }
  0x23   :  { %168 = vmatprep.subr.mxu0 %v272_v0 }
  0x24   :  { %169 = vmatpush3.msra.mxu0 %v50_v5 }
  0x25   :  { %170 = vmatprep.subr.mxu0 %v272_v0 }
  0x26   :  { %171 = vmatpush3.msra.mxu0 %v49_v6 }
  0x27   :  { %172 = vmatprep.subr.mxu0 %v272_v0 }
  0x28   :  { %173 = vmatpush3.msra.mxu0 %v48_v7 }
  0x29   :  { %174 = vmatprep.subr.mxu0 %v272_v0 }
  0x2a   :  { %175 = vmatpush3.msra.mxu0 %v47_v8 }
  0x2b   :  { %176 = vmatprep.subr.mxu0 %v272_v0 }
  0x2c   :  { %177 = vmatpush3.msra.mxu0 %v46_v9 }
  0x2d   :  { %178 = vmatprep.subr.mxu0 %v272_v0 }
  0x2e   :  { %179 = vmatpush3.msra.mxu0 %v45_v10 }
  0x2f   :  { %180 = vmatprep.subr.mxu0 %v272_v0 }
  0x30   :  { %181 = vmatpush3.msra.mxu0 %v44_v11 }
  0x31   :  { %182 = vmatprep.subr.mxu0 %v272_v0 }
  0x32   :  { %183 = vmatpush3.msra.mxu0 %v43_v12 }
  0x33   :  { %184 = vmatprep.subr.mxu0 %v272_v0 }
  0x34   :  { %185 = vmatpush3.msra.mxu0 %v42_v13 }
  0x35   :  { %186 = vmatprep.subr.mxu0 %v272_v0 }
  0x36   :  { %187 = vmatpush3.msra.mxu0 %v41_v14 }
  0x37   :  { %188 = vmatprep.subr.mxu0 %v272_v0 }
  0x38   :  { %189 = vmatpush3.msra.mxu0 %v40_v15 }
  0x39   :  { %190 = vmatprep.subr.mxu0 %v272_v0 }
  0x3a   :  { %191 = vmatpush3.msra.mxu0 %v39_v16 }
  0x3b   :  { %193 = vmatmul.mubr.f32.vlgmr.msra.gmra.mxu0 %v38_v17 }
  0xfb   :  { %v121_v18 = vpop.f32.mrf.mxu0 }
  0xfc   :  { %v125_v19 = vmax.f32 %v121_v18, 0.0 }
  0xfd   :  { %v194_v20 = vpop.f32.mrf.mxu0 }
  0xfe   :  { %126 = vst [vmem:[#allocation7] sm:$0xff] %v125_v19 }
  0xff   :  { %253 = shalt.err (!%p250_p0)
}
 0x100   :  { %136 = dma.vmem_to_hbm [thread:$0]  %s134_s1, 128, %s301_s2, [#allocation4]  }
 0x101   :  { %266 = dma.done.wait [#allocation4], 128  }
 0x102   :  { %267 = vsyncadd [#allocation4], 4294967168 }
 0x103   :  { %140 = vsyncpa [#allocation3], 1 }
 0x104   :  { %141 = vsyncpa [#allocation6], 1 }
 0x105   :  { %142 = vsyncpa [#allocation4], 1 }

</bundles_post_ra>
